<compile_context>
chip_gen: v5e
topology: v5e:2x2
jax: 0.10.0
libtpu: 0.0.40
codegen_flags: <defaults>
</compile_context>

<pallas_src>
import functools

import jax
import jax.numpy as jnp
from jax.experimental import pallas as pl
from jax.experimental.pallas import tpu as pltpu


def _cdiv(a, b):
    return -(-a // b)


def _round_up(a, b):
    return _cdiv(a, b) * b


def _conv1d_kernel(x_ref, w_ref, b_ref, o_ref, *, C_in, taps, tile_l,
                   multi_tile, fold, mxu_dtype, B_tile):
    """One (batch-block, C_out-tile, L-tile) grid step.

    x_ref: (s*C_in, W) or (B_tile, s*C_in, W) phase-decomposed padded input,
           resident across the co / L grid axes.
    w_ref: (tile_co, K*C_in) folded weights (tap-major columns).
    b_ref: (tile_co, 1) float32 bias.
    o_ref: (tile_co, tile_l) or (B_tile, tile_co, tile_l) lane-dense output.
    """
    if multi_tile:
        j0 = pl.multiple_of(pl.program_id(2) * tile_l, 128)
    else:
        j0 = 0  # static

    w = w_ref[...]
    bvec = b_ref[...]

    def compute(load_tap):
        if fold:
            # im2col: stack the K lane-shifted taps on the sublane axis and do
            # a single MXU matmul with contraction depth K*C_in.
            parts = [load_tap(p, q) for (p, q) in taps]
            xs = parts[0] if len(parts) == 1 else jnp.concatenate(parts, axis=0)
            if mxu_dtype is not None:
                xs = xs.astype(mxu_dtype)
            acc = jnp.dot(w, xs, preferred_element_type=jnp.float32)
        else:
            # Deep-channel case: per-tap matmuls, each tap loaded straight from
            # the ref (the whole halo window is never materialized).
            acc = None
            for k, (p, q) in enumerate(taps):
                xk = load_tap(p, q)
                if mxu_dtype is not None:
                    xk = xk.astype(mxu_dtype)
                part = jnp.dot(w[:, k * C_in:(k + 1) * C_in], xk,
                               preferred_element_type=jnp.float32)
                acc = part if acc is None else acc + part
        return acc + bvec

    if B_tile == 1:
        o_ref[...] = compute(
            lambda p, q: x_ref[p * C_in:(p + 1) * C_in, pl.ds(j0 + q, tile_l)]
        ).astype(o_ref.dtype)
    else:
        for b in range(B_tile):        # static unroll over packed batch rows
            o_ref[b] = compute(
                lambda p, q, b=b: x_ref[b, p * C_in:(p + 1) * C_in,
                                        pl.ds(j0 + q, tile_l)]
            ).astype(o_ref.dtype)


def conv1d_pallas(x, weight, bias=None, *, stride=1, padding=0, dilation=1,
                  mxu_dtype=None, tile_l_max=None):
    """x: (N, C_in, L), weight: (C_out, C_in, K), bias: (C_out,) -> (N, C_out, L_out).

    mxu_dtype: optional narrower MXU operand dtype (e.g. jnp.bfloat16);
    accumulation stays float32.  Default None keeps full input precision.
    """
    N, C_in, L = x.shape
    C_out, c_in_w, K = weight.shape
    assert c_in_w == C_in
    s, d, pad = int(stride), int(dilation), int(padding)
    L_out = (L + 2 * pad - d * (K - 1) - 1) // s + 1
    assert L_out >= 1

    # ---- generation-aware VMEM budget (v7x: 64 MiB, v5e/v6e: 128 MiB) ------
    try:
        vmem_cap = int(pltpu.get_tpu_info().vmem_capacity_bytes)
    except Exception:
        vmem_cap = 64 << 20                      # conservative (v7x per-core)
    budget = max(vmem_cap - (16 << 20), 16 << 20)
    if tile_l_max is None:
        tile_l_max = 1024 if vmem_cap >= (96 << 20) else 512

    # ---- C_out tiling -------------------------------------------------------
    tile_co = 128 if (C_out > 128 and C_out % 128 == 0) else C_out
    num_co = C_out // tile_co

    # ---- stride folded into a phase decomposition of the input -------------
    taps = tuple(((k * d) % s, (k * d) // s) for k in range(K))   # (p_k, q_k)
    q_max = ((K - 1) * d) // s

    # ---- L tiling -----------------------------------------------------------
    if L_out <= tile_l_max:
        if N * num_co >= 2 or L_out < 256:
            tile_l = L_out
        else:
            # keep >= 2 grid points so both TensorCores (v7x) / megacore get work
            tile_l = max(128, _round_up(_cdiv(L_out, 2), 128))
    else:
        tile_l = tile_l_max
    num_tiles = _cdiv(L_out, tile_l)

    # ---- batch packing for small problems (amortizes ~0.35us per grid step) -
    # TODO(synk): lane-pack batch rows side-by-side for >=128-lane unmasked
    #             stores when L_out < 128.
    B_tile = N if (num_tiles == 1 and 1 < N <= 64 and L_out <= 256) else 1
    num_nb = N // B_tile

    # ---- phase-decomposed, zero-padded input --------------------------------
    L_phase = num_tiles * tile_l + q_max     # lanes per phase the kernel may read
    Lp_total = L_phase * s
    right = Lp_total - (L + pad)
    if pad > 0 or right != 0:
        x_p = jnp.pad(x, ((0, 0), (0, 0), (pad, max(right, 0))))
        if right < 0:                         # tail positions are never read
            x_p = x_p[:, :, :Lp_total]
    else:
        x_p = x
    if s > 1:
        x_ph = (x_p.reshape(N, C_in, L_phase, s)
                   .transpose(0, 3, 1, 2)
                   .reshape(N, s * C_in, L_phase))
    else:
        x_ph = x_p
    if mxu_dtype is not None:
        x_ph = x_ph.astype(mxu_dtype)         # halves VMEM residency & HBM bytes

    # ---- folded weights / bias ----------------------------------------------
    KC = K * C_in
    w_fold = jnp.transpose(weight, (0, 2, 1)).reshape(C_out, KC)
    w_fold = w_fold.astype(mxu_dtype if mxu_dtype is not None else x.dtype)
    b_vec = (jnp.zeros((C_out,), jnp.float32) if bias is None
             else bias.astype(jnp.float32)).reshape(C_out, 1)

    fold = KC <= 512                          # single deep matmul vs per-tap dots

    sC = s * C_in
    x_item = jnp.dtype(x_ph.dtype).itemsize
    w_item = jnp.dtype(w_fold.dtype).itemsize
    o_item = jnp.dtype(x.dtype).itemsize
    lane_l = max(tile_l, 128)
    # Everything except the resident x slab: double-buffered weights/bias/output
    # plus in-kernel temporaries, with slack.
    other = (2 * tile_co * max(KC, 128) * w_item
             + 2 * tile_co * 128 * 4
             + 2 * B_tile * tile_co * lane_l * o_item
             + B_tile * (min(KC, 512) + tile_co) * lane_l * 4
             + (2 << 20))

    def x_slab_bytes(n_tiles):
        return B_tile * sC * (n_tiles * tile_l + q_max) * x_item

    if 2 * x_slab_bytes(num_tiles) + other <= budget:
        x_buffers, chunk_tiles = 2, num_tiles
    elif x_slab_bytes(num_tiles) + other <= budget:
        x_buffers, chunk_tiles = 1, num_tiles       # single-buffer the big row
    else:
        # Row too large even single-buffered: window the work along L at the
        # wrapper level (each window re-reads only a q_max-lane halo).
        x_buffers = 1
        per_tile = max(1, B_tile * sC * tile_l * x_item)
        chunk_tiles = int((budget - other - B_tile * sC * q_max * x_item) // per_tile)
        chunk_tiles = max(1, min(chunk_tiles, num_tiles))

    def call_chunk(x_slab, l_out_c, n_tiles_c):
        W = x_slab.shape[-1]
        kern = functools.partial(
            _conv1d_kernel, C_in=C_in, taps=taps, tile_l=tile_l,
            multi_tile=n_tiles_c > 1, fold=fold, mxu_dtype=mxu_dtype,
            B_tile=B_tile)
        if B_tile == 1:
            x_block, o_block = (None, sC, W), (None, tile_co, tile_l)
        else:
            x_block, o_block = (B_tile, sC, W), (B_tile, tile_co, tile_l)
        x_kwargs = {}
        if x_buffers == 1:
            x_kwargs["pipeline_mode"] = pl.Buffered(1)   # don't double-buffer big row
        need = x_buffers * B_tile * sC * W * x_item + other + (4 << 20)
        vmem_limit = int(min(max(need, 32 << 20), vmem_cap - (8 << 20)))
        return pl.pallas_call(
            kern,
            out_shape=jax.ShapeDtypeStruct((N, C_out, l_out_c), x.dtype),
            grid=(num_nb, num_co, n_tiles_c),
            in_specs=[
                pl.BlockSpec(x_block, lambda nb, co, j: (nb, 0, 0), **x_kwargs),
                pl.BlockSpec((tile_co, KC), lambda nb, co, j: (co, 0)),
                pl.BlockSpec((tile_co, 1), lambda nb, co, j: (co, 0)),
            ],
            out_specs=pl.BlockSpec(o_block, lambda nb, co, j: (nb, co, j)),
            compiler_params=pltpu.CompilerParams(
                dimension_semantics=("parallel", "parallel", "parallel"),
                vmem_limit_bytes=vmem_limit),
        )(x_slab, w_fold, b_vec)

    if chunk_tiles >= num_tiles:
        return call_chunk(x_ph, L_out, num_tiles)

    outs, j_out = [], 0
    while j_out < L_out:
        n_t = min(chunk_tiles, _cdiv(L_out - j_out, tile_l))
        l_out_c = min(n_t * tile_l, L_out - j_out)
        slab = x_ph[:, :, j_out:j_out + n_t * tile_l + q_max]
        outs.append(call_chunk(slab, l_out_c, n_t))
        j_out += l_out_c
    return jnp.concatenate(outs, axis=-1)


def xavier_uniform(key, shape, gain=1.0):
    # nn.init.xavier_uniform_ on Conv1d weight (C_out, C_in, K):
    # fan_in = C_in*K, fan_out = C_out*K
    c_out, c_in, k = shape
    fan_in, fan_out = c_in * k, c_out * k
    bound = gain * (6.0 / (fan_in + fan_out)) ** 0.5
    return jax.random.uniform(key, shape, jnp.float32, -bound, bound)


if __name__ == "__main__":
    key = jax.random.PRNGKey(0)

    def ref_conv(x, w, b, stride, padding, dilation):
        out = jax.lax.conv_general_dilated(
            x, w, window_strides=(stride,), padding=[(padding, padding)],
            rhs_dilation=(dilation,), dimension_numbers=("NCH", "OIH", "NCH"))
        return out + b[None, :, None]

    def make_params(k, c_in, c_out, ksz):
        kw, kb = jax.random.split(k)
        w = xavier_uniform(kw, (c_out, c_in, ksz), gain=1.0)  # gain('linear') = 1
        bound = 1.0 / ((c_in * ksz) ** 0.5)
        b = jax.random.uniform(kb, (c_out,), jnp.float32, -bound, bound)
        return w, b

    k1, k2, k3, k4, k5, k6 = jax.random.split(key, 6)

    # Case 1: Conv(4, 8, kernel_size=3, padding=1) on (2, 4, 16)
    x1 = jax.random.normal(k1, (2, 4, 16), jnp.float32)
    w1, b1 = make_params(k2, 4, 8, 3)
    out1 = jax.block_until_ready(conv1d_pallas(x1, w1, b1, stride=1, padding=1))
    ref1 = ref_conv(x1, w1, b1, 1, 1, 1)
    assert out1.shape == ref1.shape
    assert jnp.allclose(out1, ref1, atol=1e-5, rtol=1e-5)

    # Case 2: default Conv(8, 16) (kernel_size=1); longer L exercises L-tiling.
    x2 = jax.random.normal(k3, (2, 8, 700), jnp.float32)
    w2, b2 = make_params(k4, 8, 16, 1)
    out2 = jax.block_until_ready(conv1d_pallas(x2, w2, b2))
    ref2 = ref_conv(x2, w2, b2, 1, 0, 1)
    assert out2.shape == ref2.shape
    assert jnp.allclose(out2, ref2, atol=1e-5, rtol=1e-5)

    # Case 3: stride/dilation: Conv(4, 6, 3, stride=2, padding=2, dilation=2),
    # handled fully in-kernel via the stride-phase decomposition.
    x3 = jax.random.normal(k5, (2, 4, 33), jnp.float32)
    w3, b3 = make_params(k6, 4, 6, 3)
    out3 = jax.block_until_ready(
        conv1d_pallas(x3, w3, b3, stride=2, padding=2, dilation=2))
    ref3 = ref_conv(x3, w3, b3, 2, 2, 2)
    assert out3.shape == ref3.shape
    assert jnp.allclose(out3, ref3, atol=1e-5, rtol=1e-5)

    # Case 4: opt-in bf16 MXU path (f32 accumulation); compare against a
    # reference fed the same bf16-rounded operands.
    out4 = jax.block_until_ready(
        conv1d_pallas(x1, w1, b1, stride=1, padding=1, mxu_dtype=jnp.bfloat16))
    ref4 = ref_conv(x1.astype(jnp.bfloat16).astype(jnp.float32),
                    w1.astype(jnp.bfloat16).astype(jnp.float32), b1, 1, 1, 1)
    assert out4.shape == ref4.shape
    assert jnp.allclose(out4, ref4, atol=2e-2, rtol=2e-2)

    print("KERNEL_OK")
</pallas_src>

<mosaic_0001>
module attributes {stable_mosaic.version = 11 : i64} {
  func.func @_conv1d_kernel(%arg0: i32, %arg1: i32, %arg2: i32, %arg3: memref<2x4x18xf32, #tpu.memory_space<vmem>>, %arg4: memref<8x12xf32, #tpu.memory_space<vmem>>, %arg5: memref<8x1xf32, #tpu.memory_space<vmem>>, %arg6: memref<2x8x16xf32, #tpu.memory_space<vmem>>) attributes {dimension_semantics = [#tpu.dimension_semantics<parallel>, #tpu.dimension_semantics<parallel>, #tpu.dimension_semantics<parallel>], iteration_bounds = array<i64: 1, 1, 1>, scalar_prefetch = 0 : i64, scratch_operands = 0 : i64, tpu.core_type = #tpu.core_type<tc>, window_params = [{transform_indices = @transform_0, window_bounds = array<i64: 2, 4, 18>}, {transform_indices = @transform_1, window_bounds = array<i64: 8, 12>}, {transform_indices = @transform_2, window_bounds = array<i64: 8, 1>}, {transform_indices = @transform_3, window_bounds = array<i64: 2, 8, 16>}]} {
    %c0 = arith.constant 0 : index
    %c0_0 = arith.constant 0 : index
    %0 = vector.load %arg4[%c0, %c0_0] : memref<8x12xf32, #tpu.memory_space<vmem>>, vector<8x12xf32>
    %c0_1 = arith.constant 0 : index
    %c0_2 = arith.constant 0 : index
    %1 = vector.load %arg5[%c0_1, %c0_2] : memref<8x1xf32, #tpu.memory_space<vmem>>, vector<8x1xf32>
    %c0_3 = arith.constant 0 : index
    %c0_4 = arith.constant 0 : index
    %c0_5 = arith.constant 0 : index
    %2 = vector.load %arg3[%c0_3, %c0_4, %c0_5] : memref<2x4x18xf32, #tpu.memory_space<vmem>>, vector<1x4x16xf32>
    %3 = vector.shape_cast %2 : vector<1x4x16xf32> to vector<4x16xf32>
    %c0_6 = arith.constant 0 : index
    %c0_7 = arith.constant 0 : index
    %c1 = arith.constant 1 : index
    %4 = vector.load %arg3[%c0_6, %c0_7, %c1] : memref<2x4x18xf32, #tpu.memory_space<vmem>>, vector<1x4x16xf32>
    %5 = vector.shape_cast %4 : vector<1x4x16xf32> to vector<4x16xf32>
    %c0_8 = arith.constant 0 : index
    %c0_9 = arith.constant 0 : index
    %c2 = arith.constant 2 : index
    %6 = vector.load %arg3[%c0_8, %c0_9, %c2] : memref<2x4x18xf32, #tpu.memory_space<vmem>>, vector<1x4x16xf32>
    %7 = vector.shape_cast %6 : vector<1x4x16xf32> to vector<4x16xf32>
    %8 = tpu.concatenate %3, %5, %7 in 0 : vector<4x16xf32>, vector<4x16xf32>, vector<4x16xf32> -> vector<12x16xf32>
    %cst = arith.constant dense<0.000000e+00> : vector<8x16xf32>
    %9 = tpu.matmul %0, %8, %cst {dimension_numbers = #tpu.dot_dimension_numbers<[1], [0], [0], [1], [0, 0, 1, 1], [], []>} : vector<8x12xf32>, vector<12x16xf32>, vector<8x16xf32> -> vector<8x16xf32>
    %10 = vector.broadcast %1 : vector<8x1xf32> to vector<8x16xf32>
    %11 = arith.addf %9, %10 : vector<8x16xf32>
    %c0_10 = arith.constant 0 : index
    %c0_11 = arith.constant 0 : index
    %c0_12 = arith.constant 0 : index
    %12 = vector.load %arg6[%c0_10, %c0_11, %c0_12] : memref<2x8x16xf32, #tpu.memory_space<vmem>>, vector<1x8x16xf32>
    %13 = vector.shape_cast %12 : vector<1x8x16xf32> to vector<8x16xf32>
    %14 = vector.shape_cast %11 : vector<8x16xf32> to vector<1x8x16xf32>
    tpu.vector_store %arg6[%c0_10, %c0_11, %c0_12], %14 {strides = array<i32>} : memref<2x8x16xf32, #tpu.memory_space<vmem>>, vector<1x8x16xf32>,
    %c1_13 = arith.constant 1 : index
    %c0_14 = arith.constant 0 : index
    %c0_15 = arith.constant 0 : index
    %15 = vector.load %arg3[%c1_13, %c0_14, %c0_15] : memref<2x4x18xf32, #tpu.memory_space<vmem>>, vector<1x4x16xf32>
    %16 = vector.shape_cast %15 : vector<1x4x16xf32> to vector<4x16xf32>
    %c1_16 = arith.constant 1 : index
    %c0_17 = arith.constant 0 : index
    %c1_18 = arith.constant 1 : index
    %17 = vector.load %arg3[%c1_16, %c0_17, %c1_18] : memref<2x4x18xf32, #tpu.memory_space<vmem>>, vector<1x4x16xf32>
    %18 = vector.shape_cast %17 : vector<1x4x16xf32> to vector<4x16xf32>
    %c1_19 = arith.constant 1 : index
    %c0_20 = arith.constant 0 : index
    %c2_21 = arith.constant 2 : index
    %19 = vector.load %arg3[%c1_19, %c0_20, %c2_21] : memref<2x4x18xf32, #tpu.memory_space<vmem>>, vector<1x4x16xf32>
    %20 = vector.shape_cast %19 : vector<1x4x16xf32> to vector<4x16xf32>
    %21 = tpu.concatenate %16, %18, %20 in 0 : vector<4x16xf32>, vector<4x16xf32>, vector<4x16xf32> -> vector<12x16xf32>
    %cst_22 = arith.constant dense<0.000000e+00> : vector<8x16xf32>
    %22 = tpu.matmul %0, %21, %cst_22 {dimension_numbers = #tpu.dot_dimension_numbers<[1], [0], [0], [1], [0, 0, 1, 1], [], []>} : vector<8x12xf32>, vector<12x16xf32>, vector<8x16xf32> -> vector<8x16xf32>
    %23 = vector.broadcast %1 : vector<8x1xf32> to vector<8x16xf32>
    %24 = arith.addf %22, %23 : vector<8x16xf32>
    %c1_23 = arith.constant 1 : index
    %c0_24 = arith.constant 0 : index
    %c0_25 = arith.constant 0 : index
    %25 = vector.load %arg6[%c1_23, %c0_24, %c0_25] : memref<2x8x16xf32, #tpu.memory_space<vmem>>, vector<1x8x16xf32>
    %26 = vector.shape_cast %25 : vector<1x8x16xf32> to vector<8x16xf32>
    %27 = vector.shape_cast %24 : vector<8x16xf32> to vector<1x8x16xf32>
    tpu.vector_store %arg6[%c1_23, %c0_24, %c0_25], %27 {strides = array<i32>} : memref<2x8x16xf32, #tpu.memory_space<vmem>>, vector<1x8x16xf32>,
    return
  }
  func.func @transform_0(%arg0: i32, %arg1: i32, %arg2: i32) -> (i32, i32, i32) {
    %c0_i32 = arith.constant 0 : i32
    %c0_i32_0 = arith.constant 0 : i32
    %c0_i32_1 = arith.constant 0 : i32
    return %arg0, %c0_i32, %c0_i32_0 : i32, i32, i32
  }
  func.func @transform_1(%arg0: i32, %arg1: i32, %arg2: i32) -> (i32, i32) {
    %c0_i32 = arith.constant 0 : i32
    %c0_i32_0 = arith.constant 0 : i32
    return %arg1, %c0_i32 : i32, i32
  }
  func.func @transform_2(%arg0: i32, %arg1: i32, %arg2: i32) -> (i32, i32) {
    %c0_i32 = arith.constant 0 : i32
    %c0_i32_0 = arith.constant 0 : i32
    return %arg1, %c0_i32 : i32, i32
  }
  func.func @transform_3(%arg0: i32, %arg1: i32, %arg2: i32) -> (i32, i32, i32) {
    %c0_i32 = arith.constant 0 : i32
    return %arg0, %arg1, %arg2 : i32, i32, i32
  }
}

</mosaic_0001>

<bundles_post_ra>
// kernel: tpu_custom_call.1
= control target key start
LH: loop header
LB: loop body
LE: loop exit
PB: predicated region body
PF: predicated region fallthrough
CT: control target
= control target key end

     0   :  { %8 = vsyncpa [#allocation3], 0  ;;  %s240_s0 = inlined_call_operand.vmem [shape: f32[2,4,18], index: 0, kind: input, shape index: {}]   ;;  %s241_s1 = inlined_call_operand.hbm [shape: f32[8,12], index: 1, kind: input, shape index: {}]   ;;  %s242_s2 = inlined_call_operand.vmem [shape: f32[8,1], index: 2, kind: input, shape index: {}]   ;;  %s243_s3 = inlined_call_operand.hbm [shape: f32[2,8,16], index: 3, kind: output, shape index: {}]  }
   0x1   :  { %9 = vsyncpa [#allocation4], 0  ;;  %s17_s14 = sshll.u32 %s241_s1, 4  ;;  %s198_s15 = smov [#allocation2]   ;;  %s18_s14 = int_to_ptr.hbm [resolvable:$true] %s17_s14 }
   0x2   :  { %s19_s16 = sshll.u32 %s198_s15, 4  ;;  %s20_s16 = int_to_ptr.vmem [resolvable:$true] %s19_s16 }
   0x3   :  { %22 = dma.hbm_to_vmem [thread:$0]  %s18_s14, 128, %s20_s16, [#allocation3]  }
   0x4   :  { %194 = dma.done.wait [#allocation3], 128  }
   0x5   :  { %195 = vsyncadd [#allocation3], 4294967168  ;;  %v31_v0 = vld [vmem:[%s240_s0] sm:$0xf]  ;;  %v129_v1 = vld [vmem:[%s240_s0 + $0x4] sm:$0xf] }
   0x6   :  { %s199_s21 = smov 126   ;;  %v33_v2 = vrot.slane %v31_v0, 4  ;;  %v77_v3 = vrot.slane %v129_v1, 4  ;;  %s200_s1 = smov 127   ;;  %v30_v5 = vld [vmem:[%s242_s2] sm:$0xff]  ;;  %v201_v6 = vmov 0  }
   0x7   :  { %37 = vrot.lane.b32.xlu0 %v31_v0, %s199_s21  ;;  %144 = vset.pattern.permute.xlu1 %v201_v6  ;;  %vm39_vm0 = vcmask 1043456   ;;  %v29_v11 = vld [vmem:[#allocation2] sm:$0xff]  ;;  %vm46_vm1 = vcmask 97280   ;;  %vm72_vm2 = vcmask 130048   ;;  %s202_s0 = smov [#allocation5]   ;;  %s114_s26 = sshll.u32 %s243_s3, 4  ;;  %s115_s26 = int_to_ptr.hbm [resolvable:$true] %s114_s26 }
   0x8   :  { %v139_v4 = vpack.i.bf16 %v77_v3, %v33_v2  ;;  %145 = vset.pattern.permute.xlu0 %v201_v6  ;;  %s112_s2 = sshll.u32 %s202_s0, 4  ;;  %s203_s27 = smov 128   ;;  %s113_s2 = int_to_ptr.vmem [resolvable:$true] %s112_s2 }
   0x9   :  { %s204_s28 = smov 8  }
   0xa   :  { %140 = vrot.lane.b32.xlu1 %v139_v4, %s200_s1 }
   0xf   :  { %81 = vrot.lane.b32.xlu0 %v129_v1, %s199_s21 }
  0x12   :  { %43 = vperm.xlu1 %144, %v30_v5  }
  0x79   :  { %v38_v7 = vpop.permute.xlu0 %37 }
  0x7a   :  { %127 = vmatpush.msk.msra.mxu0 %vm39_vm0, %v38_v7 }
  0x7c   :  { %v141_v8 = vpop.permute.xlu1 %140 }
  0x7d   :  { %v143_v9 = vunpack.i.h.bf16 %v141_v8  ;;  %v142_v10 = vunpack.i.l.bf16 %v141_v8 }
  0x7f   :  { %v40_v12 = vsel %vm39_vm0, %v31_v0, %v142_v10  ;;  %v83_v14 = vsel %vm39_vm0, %v129_v1, %v143_v9 }
  0x80   :  { %67 = vmatpush.msra.mxu0 %v40_v12 }
  0x81   :  { %v82_v13 = vpop.permute.xlu0 %81  ;;  %128 = vmatmul.msk.f32.vlgmr.msra.gmra.mxu0 %vm46_vm1, %v29_v11 }
  0x82   :  { %130 = vmatpush.msk.msra.mxu1 %vm39_vm0, %v82_v13 }
  0x84   :  { %101 = vmatpush.msra.mxu1 %v83_v14  ;;  %v44_v15 = vpop.permute.xlu1 %43 }
  0x85   :  { %131 = vmatmul.msk.f32.vlgmr.msra.gmra.mxu1 %vm46_vm1, %v29_v11 }
  0xfe   :  { %v69_v16 = vpop.f32.mrf.mxu0 }
  0xff   :  { %v70_v17 = vadd.f32 %v69_v16, %v44_v15 }
 0x101   :  { %73 = vst.msk [vmem:[#allocation5] sm:$0xff] %vm72_vm2, %v70_v17 }
 0x102   :  { %v103_v18 = vpop.f32.mrf.mxu1 }
 0x103   :  { %v104_v19 = vadd.f32 %v103_v18, %v44_v15 }
 0x105   :  { %107 = vst.msk [vmem:[#allocation5 + $0x8] sm:$0xff] %vm72_vm2, %v104_v19 }
 0x106   :  { %120 = dma.vmem_to_hbm [thread:$0]  %s113_s2, 256, %s115_s26, [#allocation4], %s203_s27, %s203_s27, %s204_s28  }
 0x107   :  { %196 = dma.done.wait [#allocation4], 256  }
 0x108   :  { %197 = vsyncadd [#allocation4], 4294967040 }
 0x109   :  { %125 = vsyncpa [#allocation3], 1 }
 0x10a   :  { %126 = vsyncpa [#allocation4], 1 }

</bundles_post_ra>
